<compile_context>
chip_gen: v7x
topology: tpu7x:2x2x1
jax: 0.10.0
libtpu: 0.0.40
codegen_flags: <defaults>
</compile_context>

<pallas_src>
import functools

import jax
import jax.numpy as jnp
from jax.experimental import pallas as pl
from jax.experimental.pallas import tpu as pltpu


def _round_up(x, m):
    return (x + m - 1) // m * m


def _sensitivity_kernel(d_ref, sig_ref, sig_over_mu_ref, out_ref, *, hard_max_dist):
    # d_ref:           (1, tile)       distances on the lane axis
    # sig_ref:         (n_dist, 1)     sigma           (lane-0 broadcast: cheap)
    # sig_over_mu_ref: (n_dist, 1)     sigma / mu      (lane-0 broadcast: cheap)
    # out_ref:         (n_dist, tile)  lane-dense sensitivities (transposed layout)
    d = d_ref[...]                                   # (1, tile) f32
    sig = sig_ref[...]                               # (n_dist, 1)
    sig_over_mu = sig_over_mu_ref[...]               # (n_dist, 1)

    # Exact reciprocal (approx=True would be EUP-free but can exceed 1e-5 tol).
    inv_d = pl.reciprocal(d, approx=False)           # (1, tile)

    # CosCutoff, computed once per distance (O(N), lane-dense).
    scale = jnp.float32(jnp.pi * 0.5 / hard_max_dist)
    c = jnp.cos(scale * d)
    cutoff = jnp.where(d <= hard_max_dist, c * c, jnp.float32(0.0))  # (1, tile)

    # nondim = ((1/d - 1/mu) * sigma)^2 == (sigma/d - sigma/mu)^2
    # NOTE: algebraically identical to the PyTorch form; rounds slightly
    # differently but stays well within 1e-5 of the reference.
    diff = sig * inv_d - sig_over_mu                 # (n_dist, tile)
    base_sense = jnp.exp(-0.5 * (diff * diff))

    # TODO(synk): on v6e/v7x a bf16 output (or bf16 square/exp) would halve the
    # dominant HBM write stream if downstream tolerance allows; kept f32 here to
    # match the module's output dtype/precision.
    out_ref[...] = base_sense * cutoff               # broadcast (1, tile)


def gaussian_sensitivity_t(distflat, mu, sigma, hard_max_dist, *, tile_lanes=32768):
    """distflat: [N], mu/sigma: [1, n_dist] -> transposed sensitivities [n_dist, N].

    Kernel-native (lane-dense) layout; prefer this for fused consumers.
    """
    n = distflat.shape[0]
    n_dist = mu.shape[-1]

    mu_f = mu.reshape(n_dist, 1).astype(jnp.float32)
    sig_f = sigma.reshape(n_dist, 1).astype(jnp.float32)
    sig_over_mu = sig_f / mu_f                       # precomputed, invariant

    lanes = _round_up(max(n, 1), 128)

    # Lane-tile cap: user cap, additionally VMEM-capped so the double-buffered
    # output block (the largest resident buffer) stays under ~12 MiB, i.e. under
    # v5e's 16 MiB scoped-VMEM default with headroom for the input/param buffers.
    vmem_budget = 12 << 20
    vmem_cap = max(128, (vmem_budget // (2 * 4 * max(n_dist, 1))) // 128 * 128)
    cap = max(128, min(_round_up(max(tile_lanes, 1), 128), vmem_cap))

    # Small problems: single grid step (per-step overhead > any multi-core gain).
    # Large problems: multi-MiB blocks; grid length grows with N so both v7x
    # TensorCores get several steps each ("parallel" axis).
    tile = min(cap, lanes)
    n_pad = _round_up(lanes, tile)
    grid = n_pad // tile

    # Pad with a distance beyond the hard cutoff so padded lanes produce exactly
    # zero sensitivity (reduction-safe for any fused pair-axis consumer).
    pad_val = 2.0 * float(hard_max_dist)
    d_row = jnp.pad(distflat.astype(jnp.float32), (0, n_pad - n),
                    constant_values=pad_val).reshape(1, n_pad)

    # TODO(synk): hard_max_dist is baked in as a compile-time constant; if it
    # varies at runtime, pass it as a scalar-prefetch/SMEM input instead.
    kernel = functools.partial(_sensitivity_kernel,
                               hard_max_dist=float(hard_max_dist))

    out_t = pl.pallas_call(
        kernel,
        out_shape=jax.ShapeDtypeStruct((n_dist, n_pad), jnp.float32),
        grid_spec=pltpu.PrefetchScalarGridSpec(
            num_scalar_prefetch=0,
            grid=(grid,),
            in_specs=[
                pl.BlockSpec((1, tile), lambda i: (0, i)),        # distances (lanes)
                pl.BlockSpec((n_dist, 1), lambda i: (0, 0)),      # sigma
                pl.BlockSpec((n_dist, 1), lambda i: (0, 0)),      # sigma / mu
            ],
            out_specs=pl.BlockSpec((n_dist, tile), lambda i: (0, i)),
        ),
        compiler_params=pltpu.CompilerParams(
            dimension_semantics=("parallel",),
            # Raise v5e's 16 MiB scoped default; ~9 MiB actually needed at the
            # default cap, well under every generation's physical VMEM.
            vmem_limit_bytes=24 << 20,
        ),
    )(d_row, sig_f, sig_over_mu)

    return out_t[:, :n]


def gaussian_sensitivity(distflat, mu, sigma, hard_max_dist, *, tile_lanes=32768):
    """Module-semantics wrapper: [N] -> [N, n_dist] (matches PyTorch forward)."""
    # TODO(synk): this transpose re-streams the whole output through HBM purely
    # to preserve the original module's [N, n_dist] layout; downstream hippynn
    # sensesum/env-sum consumers should consume the [n_dist, N] lane-dense
    # output of gaussian_sensitivity_t directly (or be fused into the kernel).
    out_t = gaussian_sensitivity_t(distflat, mu, sigma, hard_max_dist,
                                   tile_lanes=tile_lanes)
    return out_t.T


def _reference(distflat, mu, sigma, hard_max_dist):
    d = distflat[:, None]
    nondim = (d ** (-1) - mu ** (-1)) ** 2 / sigma ** (-2)
    base = jnp.exp(-0.5 * nondim)
    cut = jnp.cos(jnp.pi / 2 * distflat / hard_max_dist) ** 2
    cut = cut * (distflat <= hard_max_dist).astype(distflat.dtype)
    return base * cut[:, None]


if __name__ == "__main__":
    # Module hyperparameters (as in GaussianSensitivityModule.__init__)
    n_dist = 32
    min_dist_soft = 0.85
    max_dist_soft = 5.0
    hard_max_dist = 6.5

    # Deterministic parameter initialization (matches __init__):
    init_mu = 1.0 / jnp.linspace(1.0 / max_dist_soft, 1.0 / min_dist_soft,
                                 n_dist, dtype=jnp.float32)
    mu = init_mu[None, :]
    sigma = jnp.full((1, n_dist), min_dist_soft * 2 * n_dist, dtype=jnp.float32)

    # TODO(synk): warn_low_distances branch (runtime Python warning on minimum
    # distance) has no in-kernel equivalent and does not affect the output.

    # Example input: flat pair distances, N = 1000 pairs (exercises padding).
    key = jax.random.PRNGKey(0)
    n_pairs = 1000
    distflat = jax.random.uniform(key, (n_pairs,), dtype=jnp.float32,
                                  minval=0.5, maxval=7.0)

    ref = _reference(distflat, mu, sigma, hard_max_dist)

    # Kernel-native (lane-dense, transposed) output — the recommended API.
    out_t = gaussian_sensitivity_t(distflat, mu, sigma, hard_max_dist)
    out_t = jax.block_until_ready(out_t)
    assert out_t.shape == (n_dist, n_pairs)
    assert jnp.allclose(out_t, ref.T, atol=1e-5, rtol=1e-5)

    # Module-semantics output (matches the PyTorch forward layout).
    out = gaussian_sensitivity(distflat, mu, sigma, hard_max_dist)
    out = jax.block_until_ready(out)
    assert out.shape == (n_pairs, n_dist)
    assert jnp.allclose(out, ref, atol=1e-5, rtol=1e-5)

    print("KERNEL_OK")
</pallas_src>

<mosaic_0001>
module attributes {stable_mosaic.version = 11 : i64} {
  func.func @_sensitivity_kernel(%arg0: i32, %arg1: memref<1x1024xf32, #tpu.memory_space<vmem>>, %arg2: memref<32x1xf32, #tpu.memory_space<vmem>>, %arg3: memref<32x1xf32, #tpu.memory_space<vmem>>, %arg4: memref<32x1024xf32, #tpu.memory_space<vmem>>) attributes {dimension_semantics = [#tpu.dimension_semantics<parallel>], iteration_bounds = array<i64: 1>, scalar_prefetch = 0 : i64, scratch_operands = 0 : i64, tpu.core_type = #tpu.core_type<tc>, window_params = [{transform_indices = @transform_0, window_bounds = array<i64: 1, 1024>}, {pipeline_mode = #tpu.pipeline_mode<synchronous>, transform_indices = @transform_1, window_bounds = array<i64: 32, 1>}, {pipeline_mode = #tpu.pipeline_mode<synchronous>, transform_indices = @transform_2, window_bounds = array<i64: 32, 1>}, {transform_indices = @transform_3, window_bounds = array<i64: 32, 1024>}]} {
    %c0 = arith.constant 0 : index
    %c0_0 = arith.constant 0 : index
    %0 = vector.load %arg1[%c0, %c0_0] : memref<1x1024xf32, #tpu.memory_space<vmem>>, vector<1x1024xf32>
    %c0_1 = arith.constant 0 : index
    %c0_2 = arith.constant 0 : index
    %1 = vector.load %arg2[%c0_1, %c0_2] : memref<32x1xf32, #tpu.memory_space<vmem>>, vector<32x1xf32>
    %c0_3 = arith.constant 0 : index
    %c0_4 = arith.constant 0 : index
    %2 = vector.load %arg3[%c0_3, %c0_4] : memref<32x1xf32, #tpu.memory_space<vmem>>, vector<32x1xf32>
    %3 = tpu.reciprocal %0 : vector<1x1024xf32> -> vector<1x1024xf32>
    %cst = arith.constant 0.241660967 : f32
    %4 = vector.broadcast %cst : f32 to vector<1x1024xf32>
    %5 = arith.mulf %4, %0 : vector<1x1024xf32>
    %6 = math.cos %5 : vector<1x1024xf32>
    %cst_5 = arith.constant 6.500000e+00 : f32
    %7 = vector.broadcast %cst_5 : f32 to vector<1x1024xf32>
    %8 = arith.cmpf ole, %0, %7 : vector<1x1024xf32>
    %9 = arith.mulf %6, %6 : vector<1x1024xf32>
    %cst_6 = arith.constant 0.000000e+00 : f32
    %10 = vector.broadcast %cst_6 : f32 to vector<1x1024xf32>
    %11 = arith.select %8, %9, %10 : vector<1x1024xi1>, vector<1x1024xf32>
    %12 = vector.broadcast %1 : vector<32x1xf32> to vector<32x1024xf32>
    %13 = vector.broadcast %3 : vector<1x1024xf32> to vector<32x1024xf32>
    %14 = arith.mulf %12, %13 : vector<32x1024xf32>
    %15 = vector.broadcast %2 : vector<32x1xf32> to vector<32x1024xf32>
    %16 = arith.subf %14, %15 : vector<32x1024xf32>
    %17 = arith.mulf %16, %16 : vector<32x1024xf32>
    %cst_7 = arith.constant -5.000000e-01 : f32
    %18 = vector.broadcast %cst_7 : f32 to vector<32x1024xf32>
    %19 = arith.mulf %18, %17 : vector<32x1024xf32>
    %20 = math.exp %19 : vector<32x1024xf32>
    %21 = vector.broadcast %11 : vector<1x1024xf32> to vector<32x1024xf32>
    %22 = arith.mulf %20, %21 : vector<32x1024xf32>
    %c0_8 = arith.constant 0 : index
    %c0_9 = arith.constant 0 : index
    %23 = vector.load %arg4[%c0_8, %c0_9] : memref<32x1024xf32, #tpu.memory_space<vmem>>, vector<32x1024xf32>
    tpu.vector_store %arg4[%c0_8, %c0_9], %22 {strides = array<i32>} : memref<32x1024xf32, #tpu.memory_space<vmem>>, vector<32x1024xf32>,
    return
  }
  func.func @transform_0(%arg0: i32) -> (i32, i32) {
    %c0_i32 = arith.constant 0 : i32
    %c0_i32_0 = arith.constant 0 : i32
    return %c0_i32, %arg0 : i32, i32
  }
  func.func @transform_1(%arg0: i32) -> (i32, i32) {
    %c0_i32 = arith.constant 0 : i32
    %c0_i32_0 = arith.constant 0 : i32
    %c0_i32_1 = arith.constant 0 : i32
    return %c0_i32, %c0_i32_0 : i32, i32
  }
  func.func @transform_2(%arg0: i32) -> (i32, i32) {
    %c0_i32 = arith.constant 0 : i32
    %c0_i32_0 = arith.constant 0 : i32
    %c0_i32_1 = arith.constant 0 : i32
    return %c0_i32, %c0_i32_0 : i32, i32
  }
  func.func @transform_3(%arg0: i32) -> (i32, i32) {
    %c0_i32 = arith.constant 0 : i32
    %c0_i32_0 = arith.constant 0 : i32
    return %c0_i32, %arg0 : i32, i32
  }
}

</mosaic_0001>

<bundles_post_ra>
// kernel: tpu_custom_call.1
= control target key start
LH: loop header
LB: loop body
LE: loop exit
PB: predicated region body
PF: predicated region fallthrough
CT: control target
= control target key end

     0   :  { %v640_v2 = vmov 0   ;;  %s855_s0 = inlined_call_operand.vmem [shape: f32[1,1024], index: 0, kind: input, shape index: {}]   ;;  %s856_s1 = inlined_call_operand.vmem [shape: f32[32,1], index: 1, kind: input, shape index: {}]   ;;  %s857_s2 = inlined_call_operand.vmem [shape: f32[32,1], index: 2, kind: input, shape index: {}]   ;;  %s858_s3 = inlined_call_operand.hbm [shape: f32[32,1024], index: 3, kind: output, shape index: {}]  }
   0x1   :  { %v18_v0 = vld [vmem:[%s856_s1 + $0x10] sm:$0xff]  ;;  %v16_v1 = vld [vmem:[%s856_s1] sm:$0xff]  ;;  %545 = vset.pattern.permute.xlu1 %v640_v2  ;;  %544 = vset.pattern.permute.xlu0 %v640_v2  ;;  %v19_v3 = vld [vmem:[%s856_s1 + $0x18] sm:$0xff] }
   0x2   :  { %144 = vperm.xlu1 %545, %v18_v0   ;;  %134 = vperm.xlu0 %544, %v16_v1   ;;  %v17_v4 = vld [vmem:[%s856_s1 + $0x8] sm:$0xff]  ;;  %v685_v5 = vld [vmem:[%s855_s0] sm:$0xff] }
   0x3   :  { %v688_v6 = vmul.f32 0.24166097, %v685_v5 }
   0x4   :  { %8 = vsyncpa [#allocation3], 0  ;;  %v21_v7 = vld [vmem:[%s857_s2 + $0x8] sm:$0xff]  ;;  %v20_v8 = vld [vmem:[%s857_s2] sm:$0xff]  ;;  %v641_v22 = vmov 683565275  }
   0x5   :  { %v29_v9 = vand.u32 2139095040, %v688_v6  ;;  %v26_v11 = vand.u32 2147483647, %v688_v6  ;;  %v23_v12 = vld [vmem:[%s857_s2 + $0x18] sm:$0xff]  ;;  %v22_v13 = vld [vmem:[%s857_s2 + $0x10] sm:$0xff]  ;;  %vm28_vm7 = vcmp.lt.s32.totalorder %v688_v6, 0  ;;  %vm118_vm12 = vweird.f32 %v688_v6 }
   0x6   :  { %149 = vperm.xlu1 %545, %v19_v3   ;;  %139 = vperm.xlu0 %544, %v17_v4   ;;  %v642_v24 = vmov 2475754826   ;;  %v643_v26 = vmov 2131351028   ;;  %v644_v28 = vmov 2102212464  }
   0x7   :  { %v30_v10 = vshrl.u32 %v29_v9, 23  ;;  %v33_v16 = vand.u32 8388607, %v26_v11  ;;  %v645_v30 = vmov 920167782   ;;  %vm129_vm13 = vcmp.le.f32.partialorder %v685_v5, 6.5 }
   0x8   :  { %v646_v37 = vmov 1326507024   ;;  %vm27_vm8 = vcmp.le.f32.partialorder %v26_v11, 0.7853982  ;;  %s647_s2 = smov [#allocation2]  }
   0x9   :  { %v526_v14 = vadd.s32 4294967169, %v30_v10  ;;  %v34_v19 = vor.u32 8388608, %v33_v16  ;;  %s515_s28 = sshll.u32 %s647_s2, 4  ;;  %s516_s28 = int_to_ptr.vmem [resolvable:$true] %s515_s28 }
   0xa   :  { %232 = vperm.xlu1 %545, %v21_v7   ;;  %227 = vperm.xlu0 %544, %v20_v8   ;;  %s616_s29 = scalar_lea.vmem %s516_s28, 4096  ;;  %p621_p1 = scmp.lt.s32.totalorder %s516_s28, %s516_s28 }
   0xb   :  { %v36_v15 = vadd.s32 1, %v526_v14  ;;  %v74_v39 = vshll.u32 %v34_v19, 8  ;;  %p617_p0 = scmp.ne.s32.totalorder %s516_s28, %s616_s29  ;;  %p622_p2 = scmp.lt.s32.totalorder %s616_s29, %s616_s29 }
   0xd   :  { %vm37_vm0 = vcmp.gt.s32.totalorder %v36_v15, 0  ;;  %p623_p3 = por %p622_p2, %p621_p1 }
   0xe   :  { %242 = vperm.xlu1 %545, %v23_v12   ;;  %237 = vperm.xlu0 %544, %v22_v13   ;;  %v38_v17 = vsel %vm37_vm0, %v36_v15, 0 }
   0xf   :  { %v40_v18 = vand.u32 31, %v38_v17  ;;  %v39_v20 = vshrl.u32 %v38_v17, 5  ;;  %p624_p4 = pnand %p623_p3, %p617_p0 }
  0x11   :  { %v41_v21 = vsub.s32 32, %v40_v18  ;;  %v43_v23 = vshll.u32 %v641_v22, %v40_v18  ;;  %v46_v25 = vshll.u32 %v642_v24, %v40_v18  ;;  %v49_v27 = vshll.u32 %v643_v26, %v40_v18 }
  0x12   :  { %v52_v29 = vshll.u32 %v644_v28, %v40_v18  ;;  %v55_v31 = vshll.u32 %v645_v30, %v40_v18  ;;  %vm58_vm1 = vcmp.lt.s32.totalorder %v39_v20, 1  ;;  %vm61_vm2 = vcmp.lt.s32.totalorder %v39_v20, 4 }
  0x13   :  { %v42_v32 = vshrl.u32 %v641_v22, %v41_v21  ;;  %v44_v33 = vshrl.u32 %v642_v24, %v41_v21  ;;  %v47_v34 = vshrl.u32 %v643_v26, %v41_v21  ;;  %v50_v35 = vshrl.u32 %v644_v28, %v41_v21 }
  0x14   :  { %v53_v36 = vshrl.u32 %v645_v30, %v41_v21  ;;  %v56_v38 = vshrl.u32 %v646_v37, %v41_v21  ;;  %vm59_vm3 = vcmp.lt.s32.totalorder %v39_v20, 2  ;;  %vm60_vm4 = vcmp.lt.s32.totalorder %v39_v20, 3 }
  0x15   :  { %v45_v40 = vor.u32 %v44_v33, %v43_v23  ;;  %v48_v41 = vor.u32 %v47_v34, %v46_v25  ;;  %v51_v42 = vor.u32 %v50_v35, %v49_v27 }
  0x16   :  { %v54_v43 = vor.u32 %v53_v36, %v52_v29  ;;  %v57_v44 = vor.u32 %v56_v38, %v55_v31 }
  0x17   :  { %v62_v45 = vsel %vm58_vm1, %v42_v32, %v45_v40  ;;  %v63_v46 = vsel %vm61_vm2, %v51_v42, 2102212464  ;;  %v66_v47 = vsel %vm58_vm1, %v45_v40, %v48_v41  ;;  %v70_v48 = vsel %vm58_vm1, %v48_v41, %v51_v42 }
  0x18   :  { %v64_v49 = vsel %vm60_vm4, %v48_v41, %v63_v46  ;;  %v67_v50 = vsel %vm61_vm2, %v54_v43, 920167782  ;;  %v71_v51 = vsel %vm61_vm2, %v57_v44, 1326507024  ;;  %v153_v41 = vlaneseq }
  0x19   :  { %v68_v52 = vsel %vm60_vm4, %v51_v42, %v67_v50  ;;  %v72_v53 = vsel %vm60_vm4, %v54_v43, %v71_v51  ;;  %v65_v54 = vsel %vm59_vm3, %v62_v45, %v64_v49 }
  0x1a   :  { %v69_v55 = vsel %vm59_vm3, %v66_v47, %v68_v52  ;;  %v73_v56 = vsel %vm59_vm3, %v70_v48, %v72_v53  ;;  %v81_v61 = vmul.u32 %v74_v39, %v65_v54  ;;  %v154_v42 = vshrl.u32 %v153_v41, 7 }
  0x1b   :  { %v706_v57 = vmul.u32.u64.low %v74_v39, %v73_v56  ;;  %v707_v58 = vmul.u32.u64.high %v74_v39, %v73_v56, %v706_v57  ;;  %v709_v59 = vmul.u32.u64.low %v74_v39, %v69_v55  ;;  %v710_v60 = vmul.u32.u64.high %v74_v39, %v69_v55, %v709_v59 }
  0x1c   :  { %v155_v43 = vsub.s32 0, %v154_v42  ;;  %v159_v44 = vsub.s32 1, %v154_v42  ;;  %v163_v45 = vsub.s32 2, %v154_v42  ;;  %v167_v46 = vsub.s32 3, %v154_v42 }
  0x1d   :  { %vm83_vm5 = vc.u32 %v707_v58, %v709_v59  ;;  %v84_v62 = vadd.s32 1, %v710_v60  ;;  %v82_v12 = vadd.s32 %v709_v59, %v707_v58  ;;  %v171_v48 = vsub.s32 4, %v154_v42 }
  0x1e   :  { %v175_v49 = vsub.s32 5, %v154_v42  ;;  %v183_v50 = vsub.s32 7, %v154_v42 }
  0x1f   :  { %v85_v63 = vsel %vm83_vm5, %v84_v62, %v710_v60 }
  0x20   :  { %v86_v0 = vadd.s32 %v85_v63, %v81_v61 }
  0x22   :  { %v87_v1 = vadd.s32 536870912, %v86_v0 }
  0x24   :  { %v88_v2 = vshrl.u32 %v87_v1, 30 }
  0x26   :  { %v89_v3 = vshll.u32 %v88_v2, 30  ;;  %v112_v26 = vsub.s32 4, %v88_v2 }
  0x28   :  { %v90_v4 = vsub.s32 %v86_v0, %v89_v3  ;;  %v113_v29 = vsel %vm28_vm7, %v112_v26, %v88_v2 }
  0x29   :  { %v115_v30 = vsel %vm27_vm8, 0, %v113_v29 }
  0x2a   :  { %v92_v7 = vsub.s32 0, %v90_v4  ;;  %v119_v31 = vand.u32 3, %v115_v30 }
  0x2c   :  { %v527_v8 = vmin.u32 %v92_v7, %v90_v4  ;;  %vm124_vm9 = vcmp.eq.s32.totalorder %v119_v31, 2  ;;  %vm121_vm10 = vcmp.eq.s32.totalorder %v119_v31, 0  ;;  %vm120_vm11 = vcmp.lt.s32.totalorder %v119_v31, 2 }
  0x2e   :  { %v94_v9 = vclz %v527_v8 }
  0x30   :  { %v528_v10 = vadd.s32 4294967294, %v94_v9 }
  0x32   :  { %vm529_vm6 = vcmp.lt.s32.totalorder %v528_v10, 0 }
  0x33   :  { %v97_v13 = vsel %vm529_vm6, 0, %v528_v10 }
  0x34   :  { %v98_v14 = vsub.s32 32, %v97_v13  ;;  %v99_v15 = vshll.u32 %v90_v4, %v97_v13  ;;  %v102_v16 = vsub.s32 4294967266, %v97_v13 }
  0x36   :  { %v100_v17 = vshrl.u32 %v82_v12, %v98_v14  ;;  %v103_v18 = vadd.s32 127, %v102_v16 }
  0x38   :  { %v101_v19 = vor.u32 %v100_v17, %v99_v15  ;;  %v104_v20 = vshll.u32 %v103_v18, 23 }
  0x3a   :  { %v105_v21 = vor.u32 4788187, %v104_v20  ;;  %v108_v22 = vcvt.s32.f32 %v101_v19 }
  0x3c   :  { %v106_v23 = vand.u32 2147483647, %v105_v21 }
  0x3e   :  { %v109_v24 = vmul.f32 %v108_v22, %v106_v23 }
  0x40   :  { %v110_v25 = vxor.u32 2147483648, %v109_v24 }
  0x42   :  { %v111_v27 = vsel %vm28_vm7, %v110_v25, %v109_v24 }
  0x43   :  { %v114_v28 = vsel %vm27_vm8, %v688_v6, %v111_v27  ;;  %v179_v6 = vsub.s32 6, %v154_v42 }
  0x44   :  { %546 = vcosq.f32 %v114_v28 }
  0x45   :  { %548 = vsinq.f32 %v114_v28 }
  0x46   :  { %550 = vrcp.f32 %v685_v5 }
  0x4e   :  { %v547_v32 = vpop.eup %546 }
  0x4f   :  { %v549_v33 = vpop.eup %548  ;;  %v125_v34 = vxor.u32 2147483648, %v547_v32 }
  0x50   :  { %v122_v35 = vxor.u32 2147483648, %v549_v33  ;;  %v551_v47 = vpop.eup %550 }
  0x51   :  { %v126_v11 = vsel %vm124_vm9, %v125_v34, %v549_v33  ;;  %v156_v51 = vrot.slane %v551_v47, %v155_v43  ;;  %v160_v52 = vrot.slane %v551_v47, %v159_v44  ;;  %v164_v53 = vrot.slane %v551_v47, %v163_v45 }
  0x52   :  { %v123_v36 = vsel %vm121_vm10, %v547_v32, %v122_v35  ;;  %v168_v54 = vrot.slane %v551_v47, %v167_v46  ;;  %v172_v55 = vrot.slane %v551_v47, %v171_v48  ;;  %v176_v56 = vrot.slane %v551_v47, %v175_v49 }
  0x53   :  { %v127_v37 = vsel %vm120_vm11, %v123_v36, %v126_v11  ;;  %v180_v57 = vrot.slane %v551_v47, %v179_v6  ;;  %v184_v58 = vrot.slane %v551_v47, %v183_v50 }
  0x54   :  { %v128_v38 = vsel %vm118_vm12, nan, %v127_v37 }
  0x55   :  { %v130_v39 = vmul.f32 %v128_v38, %v128_v38 }
  0x57   :  { %v131_v40 = vsel %vm129_vm13, %v130_v39, 0.0 }
  0x58   :  { %v723_v5 = vrot.slane %v131_v40, %v155_v43  ;;  %v725_v59 = vrot.slane %v131_v40, %v159_v44  ;;  %v727_v60 = vrot.slane %v131_v40, %v163_v45  ;;  %v729_v61 = vrot.slane %v131_v40, %v167_v46 }
  0x59   :  { %v731_v0 = vrot.slane %v131_v40, %v171_v48  ;;  %v733_v1 = vrot.slane %v131_v40, %v175_v49  ;;  %v735_v2 = vrot.slane %v131_v40, %v179_v6  ;;  %v737_v3 = vrot.slane %v131_v40, %v183_v50 }
  0x81   :  { %v145_v62 = vpop.permute.xlu1 %144  ;;  %v135_v63 = vpop.permute.xlu0 %134 }
  0x82   :  { %v739_v4 = vmul.f32 %v156_v51, %v135_v63  ;;  %v741_v7 = vmul.f32 %v160_v52, %v135_v63  ;;  %v743_v8 = vmul.f32 %v164_v53, %v135_v63  ;;  %v745_v9 = vmul.f32 %v168_v54, %v135_v63 }
  0x83   :  { %v747_v10 = vmul.f32 %v172_v55, %v135_v63  ;;  %v749_v12 = vmul.f32 %v176_v56, %v135_v63  ;;  %v751_v13 = vmul.f32 %v180_v57, %v135_v63  ;;  %v753_v14 = vmul.f32 %v184_v58, %v135_v63 }
  0x84   :  { %v755_v15 = vmul.f32 %v156_v51, %v145_v62  ;;  %v757_v16 = vmul.f32 %v160_v52, %v145_v62  ;;  %v759_v17 = vmul.f32 %v164_v53, %v145_v62  ;;  %v761_v18 = vmul.f32 %v168_v54, %v145_v62 }
  0x85   :  { %v150_v19 = vpop.permute.xlu1 %149  ;;  %v140_v20 = vpop.permute.xlu0 %139  ;;  %v763_v21 = vmul.f32 %v172_v55, %v145_v62  ;;  %v765_v22 = vmul.f32 %v176_v56, %v145_v62  ;;  %v767_v23 = vmul.f32 %v180_v57, %v145_v62  ;;  %v769_v24 = vmul.f32 %v184_v58, %v145_v62 }
  0x86   :  { %v201_v25 = vmul.f32 %v156_v51, %v140_v20  ;;  %v202_v26 = vmul.f32 %v160_v52, %v140_v20  ;;  %v203_v27 = vmul.f32 %v164_v53, %v140_v20  ;;  %v204_v28 = vmul.f32 %v168_v54, %v140_v20 }
  0x87   :  { %v205_v29 = vmul.f32 %v172_v55, %v140_v20  ;;  %v206_v30 = vmul.f32 %v176_v56, %v140_v20  ;;  %v207_v31 = vmul.f32 %v180_v57, %v140_v20  ;;  %v208_v32 = vmul.f32 %v184_v58, %v140_v20 }
  0x88   :  { %v771_v33 = vmul.f32 %v156_v51, %v150_v19  ;;  %v773_v34 = vmul.f32 %v160_v52, %v150_v19  ;;  %v775_v35 = vmul.f32 %v164_v53, %v150_v19  ;;  %v777_v11 = vmul.f32 %v168_v54, %v150_v19 }
  0x89   :  { %v233_v36 = vpop.permute.xlu1 %232  ;;  %v779_v37 = vmul.f32 %v172_v55, %v150_v19  ;;  %v781_v38 = vmul.f32 %v176_v56, %v150_v19  ;;  %v783_v39 = vmul.f32 %v180_v57, %v150_v19  ;;  %v785_v40 = vmul.f32 %v184_v58, %v150_v19  ;;  %v228_v56 = vpop.permute.xlu0 %227 }
  0x8a   :  { %v253_v41 = vsub.f32 %v201_v25, %v233_v36  ;;  %v254_v42 = vsub.f32 %v202_v26, %v233_v36  ;;  %v255_v43 = vsub.f32 %v203_v27, %v233_v36  ;;  %v256_v44 = vsub.f32 %v204_v28, %v233_v36 }
  0x8b   :  { %v257_v45 = vsub.f32 %v205_v29, %v233_v36  ;;  %v258_v46 = vsub.f32 %v206_v30, %v233_v36  ;;  %v259_v47 = vsub.f32 %v207_v31, %v233_v36  ;;  %v260_v48 = vsub.f32 %v208_v32, %v233_v36 }
  0x8c   :  { %v285_v49 = vmul.f32 %v253_v41, %v253_v41  ;;  %v286_v6 = vmul.f32 %v254_v42, %v254_v42  ;;  %v287_v50 = vmul.f32 %v255_v43, %v255_v43  ;;  %v288_v51 = vmul.f32 %v256_v44, %v256_v44 }
  0x8d   :  { %v289_v52 = vmul.f32 %v257_v45, %v257_v45  ;;  %v290_v53 = vmul.f32 %v258_v46, %v258_v46  ;;  %v291_v54 = vmul.f32 %v259_v47, %v259_v47  ;;  %v292_v55 = vmul.f32 %v260_v48, %v260_v48 }
  0x8e   :  { %v317_v57 = vmul.f32 -0.5, %v285_v49  ;;  %v318_v58 = vmul.f32 -0.5, %v286_v6  ;;  %v319_v62 = vmul.f32 -0.5, %v287_v50  ;;  %v320_v63 = vmul.f32 -0.5, %v288_v51 }
  0x8f   :  { %v321_v19 = vmul.f32 -0.5, %v289_v52  ;;  %v322_v20 = vmul.f32 -0.5, %v290_v53  ;;  %v323_v25 = vmul.f32 -0.5, %v291_v54  ;;  %v324_v26 = vmul.f32 -0.5, %v292_v55  ;;  %v243_v54 = vpop.permute.xlu1 %242 }
  0x90   :  { %v357_v27 = vmul.f32 1.442695, %v317_v57  ;;  %v359_v28 = vmul.f32 1.442695, %v318_v58  ;;  %v361_v29 = vmul.f32 1.442695, %v319_v62  ;;  %v245_v30 = vsub.f32 %v739_v4, %v228_v56 }
  0x91   :  { %v363_v31 = vmul.f32 1.442695, %v320_v63  ;;  %v365_v32 = vmul.f32 1.442695, %v321_v19  ;;  %v367_v36 = vmul.f32 1.442695, %v322_v20  ;;  %v246_v41 = vsub.f32 %v741_v7, %v228_v56 }
  0x92   :  { %552 = vpow2.f32 %v357_v27  ;;  %v369_v42 = vmul.f32 1.442695, %v323_v25  ;;  %v371_v43 = vmul.f32 1.442695, %v324_v26  ;;  %v247_v44 = vsub.f32 %v743_v8, %v228_v56 }
  0x93   :  { %554 = vpow2.f32 %v359_v28  ;;  %v248_v45 = vsub.f32 %v745_v9, %v228_v56  ;;  %v249_v46 = vsub.f32 %v747_v10, %v228_v56  ;;  %v250_v47 = vsub.f32 %v749_v12, %v228_v56 }
  0x94   :  { %556 = vpow2.f32 %v361_v29  ;;  %v251_v4 = vsub.f32 %v751_v13, %v228_v56  ;;  %v252_v48 = vsub.f32 %v753_v14, %v228_v56  ;;  %v277_v49 = vmul.f32 %v245_v30, %v245_v30 }
  0x95   :  { %558 = vpow2.f32 %v363_v31  ;;  %v278_v7 = vmul.f32 %v246_v41, %v246_v41  ;;  %v279_v6 = vmul.f32 %v247_v44, %v247_v44  ;;  %v280_v50 = vmul.f32 %v248_v45, %v248_v45 }
  0x96   :  { %560 = vpow2.f32 %v365_v32  ;;  %v281_v51 = vmul.f32 %v249_v46, %v249_v46  ;;  %v282_v8 = vmul.f32 %v250_v47, %v250_v47  ;;  %v283_v52 = vmul.f32 %v251_v4, %v251_v4 }
  0x97   :  { %562 = vpow2.f32 %v367_v36  ;;  %v284_v9 = vmul.f32 %v252_v48, %v252_v48  ;;  %v309_v53 = vmul.f32 -0.5, %v277_v49  ;;  %v310_v10 = vmul.f32 -0.5, %v278_v7 }
  0x98   :  { %564 = vpow2.f32 %v369_v42  ;;  %v311_v12 = vmul.f32 -0.5, %v279_v6  ;;  %v312_v55 = vmul.f32 -0.5, %v280_v50  ;;  %v313_v13 = vmul.f32 -0.5, %v281_v51 }
  0x99   :  { %566 = vpow2.f32 %v371_v43  ;;  %v314_v14 = vmul.f32 -0.5, %v282_v8  ;;  %v315_v56 = vmul.f32 -0.5, %v283_v52  ;;  %v316_v57 = vmul.f32 -0.5, %v284_v9 }
  0x9a   :  { %v341_v58 = vmul.f32 1.442695, %v309_v53  ;;  %v343_v62 = vmul.f32 1.442695, %v310_v10  ;;  %v345_v63 = vmul.f32 1.442695, %v311_v12  ;;  %v269_v19 = vsub.f32 %v771_v33, %v243_v54  ;;  %v238_v10 = vpop.permute.xlu0 %237 }
  0x9b   :  { %v347_v20 = vmul.f32 1.442695, %v312_v55  ;;  %v349_v25 = vmul.f32 1.442695, %v313_v13  ;;  %v351_v26 = vmul.f32 1.442695, %v314_v14  ;;  %v270_v27 = vsub.f32 %v773_v34, %v243_v54 }
  0x9c   :  { %v553_v28 = vpop.eup %552  ;;  %568 = vpow2.f32 %v341_v58  ;;  %v353_v29 = vmul.f32 1.442695, %v315_v56  ;;  %v355_v30 = vmul.f32 1.442695, %v316_v57  ;;  %v271_v31 = vsub.f32 %v775_v35, %v243_v54 }
  0x9d   :  { %v555_v32 = vpop.eup %554  ;;  %v454_v36 = vmul.f32 %v553_v28, %v723_v5  ;;  %570 = vpow2.f32 %v343_v62  ;;  %v272_v41 = vsub.f32 %v777_v11, %v243_v54  ;;  %v273_v42 = vsub.f32 %v779_v37, %v243_v54 }
  0x9e   :  { %v557_v33 = vpop.eup %556  ;;  %v455_v43 = vmul.f32 %v555_v32, %v725_v59  ;;  %572 = vpow2.f32 %v345_v63  ;;  %v274_v34 = vsub.f32 %v781_v38, %v243_v54  ;;  %v275_v44 = vsub.f32 %v783_v39, %v243_v54 }
  0x9f   :  { %v559_v45 = vpop.eup %558  ;;  %v456_v46 = vmul.f32 %v557_v33, %v727_v60  ;;  %486 = vst [vmem:[#allocation2 + $0x40] sm:$0xff] %v454_v36  ;;  %574 = vpow2.f32 %v347_v20  ;;  %v276_v35 = vsub.f32 %v785_v40, %v243_v54  ;;  %v301_v47 = vmul.f32 %v269_v19, %v269_v19 }
  0xa0   :  { %v561_v4 = vpop.eup %560  ;;  %v457_v11 = vmul.f32 %v559_v45, %v729_v61  ;;  %487 = vst [vmem:[#allocation2 + $0x48] sm:$0xff] %v455_v43  ;;  %576 = vpow2.f32 %v349_v25  ;;  %v302_v37 = vmul.f32 %v270_v27, %v270_v27  ;;  %v303_v48 = vmul.f32 %v271_v31, %v271_v31 }
  0xa1   :  { %v563_v49 = vpop.eup %562  ;;  %v458_v38 = vmul.f32 %v561_v4, %v731_v0  ;;  %488 = vst [vmem:[#allocation2 + $0x50] sm:$0xff] %v456_v46  ;;  %578 = vpow2.f32 %v351_v26  ;;  %v304_v39 = vmul.f32 %v272_v41, %v272_v41  ;;  %v305_v7 = vmul.f32 %v273_v42, %v273_v42 }
  0xa2   :  { %v565_v6 = vpop.eup %564  ;;  %v459_v50 = vmul.f32 %v563_v49, %v733_v1  ;;  %489 = vst [vmem:[#allocation2 + $0x58] sm:$0xff] %v457_v11  ;;  %580 = vpow2.f32 %v353_v29  ;;  %v306_v40 = vmul.f32 %v274_v34, %v274_v34  ;;  %v307_v51 = vmul.f32 %v275_v44, %v275_v44 }
  0xa3   :  { %v567_v8 = vpop.eup %566  ;;  %v460_v52 = vmul.f32 %v565_v6, %v735_v2  ;;  %490 = vst [vmem:[#allocation2 + $0x60] sm:$0xff] %v458_v38  ;;  %582 = vpow2.f32 %v355_v30  ;;  %v308_v9 = vmul.f32 %v276_v35, %v276_v35  ;;  %v333_v53 = vmul.f32 -0.5, %v301_v47 }
  0xa4   :  { %v461_v54 = vmul.f32 %v567_v8, %v737_v3  ;;  %491 = vst [vmem:[#allocation2 + $0x68] sm:$0xff] %v459_v50  ;;  %v334_v12 = vmul.f32 -0.5, %v302_v37  ;;  %v335_v55 = vmul.f32 -0.5, %v303_v48  ;;  %v336_v13 = vmul.f32 -0.5, %v304_v39 }
  0xa5   :  { %492 = vst [vmem:[#allocation2 + $0x70] sm:$0xff] %v460_v52  ;;  %v337_v14 = vmul.f32 -0.5, %v305_v7  ;;  %v338_v56 = vmul.f32 -0.5, %v306_v40  ;;  %v339_v57 = vmul.f32 -0.5, %v307_v51  ;;  %v340_v58 = vmul.f32 -0.5, %v308_v9 }
  0xa6   :  { %v569_v62 = vpop.eup %568  ;;  %493 = vst [vmem:[#allocation2 + $0x78] sm:$0xff] %v461_v54  ;;  %v389_v63 = vmul.f32 1.442695, %v333_v53  ;;  %v391_v19 = vmul.f32 1.442695, %v334_v12  ;;  %v261_v25 = vsub.f32 %v755_v15, %v238_v10  ;;  %v262_v43 = vsub.f32 %v757_v16, %v238_v10 }
  0xa7   :  { %v393_v20 = vmul.f32 1.442695, %v335_v55  ;;  %v571_v26 = vpop.eup %570  ;;  %v446_v27 = vmul.f32 %v569_v62, %v723_v5  ;;  %v395_v28 = vmul.f32 1.442695, %v336_v13  ;;  %v397_v29 = vmul.f32 1.442695, %v337_v14 }
  0xa8   :  { %v399_v30 = vmul.f32 1.442695, %v338_v56  ;;  %v573_v31 = vpop.eup %572  ;;  %v447_v32 = vmul.f32 %v571_v26, %v725_v59  ;;  %584 = vpow2.f32 %v389_v63  ;;  %v401_v36 = vmul.f32 1.442695, %v339_v57 }
  0xa9   :  { %v403_v41 = vmul.f32 1.442695, %v340_v58  ;;  %v575_v42 = vpop.eup %574  ;;  %v448_v33 = vmul.f32 %v573_v31, %v727_v60  ;;  %478 = vst [vmem:[#allocation2] sm:$0xff] %v446_v27  ;;  %586 = vpow2.f32 %v391_v19  ;;  %v263_v15 = vsub.f32 %v759_v17, %v238_v10 }
  0xaa   :  { %v577_v34 = vpop.eup %576  ;;  %v449_v44 = vmul.f32 %v575_v42, %v729_v61  ;;  %479 = vst [vmem:[#allocation2 + $0x8] sm:$0xff] %v447_v32  ;;  %588 = vpow2.f32 %v393_v20  ;;  %v264_v45 = vsub.f32 %v761_v18, %v238_v10  ;;  %v265_v46 = vsub.f32 %v763_v21, %v238_v10 }
  0xab   :  { %v579_v35 = vpop.eup %578  ;;  %v450_v47 = vmul.f32 %v577_v34, %v731_v0  ;;  %480 = vst [vmem:[#allocation2 + $0x10] sm:$0xff] %v448_v33  ;;  %590 = vpow2.f32 %v395_v28  ;;  %v266_v4 = vsub.f32 %v765_v22, %v238_v10  ;;  %v267_v16 = vsub.f32 %v767_v23, %v238_v10 }
  0xac   :  { %v581_v11 = vpop.eup %580  ;;  %v451_v17 = vmul.f32 %v579_v35, %v733_v1  ;;  %481 = vst [vmem:[#allocation2 + $0x18] sm:$0xff] %v449_v44  ;;  %592 = vpow2.f32 %v397_v29  ;;  %v268_v37 = vsub.f32 %v769_v24, %v238_v10  ;;  %v293_v48 = vmul.f32 %v261_v25, %v261_v25 }
  0xad   :  { %v583_v18 = vpop.eup %582  ;;  %v452_v21 = vmul.f32 %v581_v11, %v735_v2  ;;  %482 = vst [vmem:[#allocation2 + $0x20] sm:$0xff] %v450_v47  ;;  %594 = vpow2.f32 %v399_v30  ;;  %v294_v49 = vmul.f32 %v262_v43, %v262_v43  ;;  %v295_v38 = vmul.f32 %v263_v15, %v263_v15 }
  0xae   :  { %v453_v39 = vmul.f32 %v583_v18, %v737_v3  ;;  %483 = vst [vmem:[#allocation2 + $0x28] sm:$0xff] %v451_v17  ;;  %596 = vpow2.f32 %v401_v36  ;;  %v296_v22 = vmul.f32 %v264_v45, %v264_v45  ;;  %v297_v23 = vmul.f32 %v265_v46, %v265_v46 }
  0xaf   :  { %484 = vst [vmem:[#allocation2 + $0x30] sm:$0xff] %v452_v21  ;;  %598 = vpow2.f32 %v403_v41  ;;  %v298_v7 = vmul.f32 %v266_v4, %v266_v4  ;;  %v299_v6 = vmul.f32 %v267_v16, %v267_v16  ;;  %v300_v50 = vmul.f32 %v268_v37, %v268_v37 }
  0xb0   :  { %485 = vst [vmem:[#allocation2 + $0x38] sm:$0xff] %v453_v39  ;;  %v325_v24 = vmul.f32 -0.5, %v293_v48  ;;  %v326_v40 = vmul.f32 -0.5, %v294_v49  ;;  %v327_v51 = vmul.f32 -0.5, %v295_v38  ;;  %v328_v8 = vmul.f32 -0.5, %v296_v22 }
  0xb1   :  { %v329_v52 = vmul.f32 -0.5, %v297_v23  ;;  %v330_v9 = vmul.f32 -0.5, %v298_v7  ;;  %v331_v53 = vmul.f32 -0.5, %v299_v6  ;;  %v332_v56 = vmul.f32 -0.5, %v300_v50 }
  0xb2   :  { %v585_v10 = vpop.eup %584  ;;  %v373_v54 = vmul.f32 1.442695, %v325_v24  ;;  %v375_v12 = vmul.f32 1.442695, %v326_v40  ;;  %v377_v55 = vmul.f32 1.442695, %v327_v51 }
  0xb3   :  { %v587_v13 = vpop.eup %586  ;;  %v470_v14 = vmul.f32 %v585_v10, %v723_v5  ;;  %v379_v57 = vmul.f32 1.442695, %v328_v8  ;;  %v381_v63 = vmul.f32 1.442695, %v329_v52  ;;  %v383_v25 = vmul.f32 1.442695, %v330_v9 }
  0xb4   :  { %v589_v58 = vpop.eup %588  ;;  %v471_v62 = vmul.f32 %v587_v13, %v725_v59  ;;  %600 = vpow2.f32 %v373_v54  ;;  %v385_v28 = vmul.f32 1.442695, %v331_v53  ;;  %v387_v31 = vmul.f32 1.442695, %v332_v56 }
  0xb5   :  { %v591_v19 = vpop.eup %590  ;;  %v472_v20 = vmul.f32 %v589_v58, %v727_v60  ;;  %502 = vst [vmem:[#allocation2 + $0xc0] sm:$0xff] %v470_v14  ;;  %602 = vpow2.f32 %v375_v12 }
  0xb6   :  { %v593_v26 = vpop.eup %592  ;;  %v473_v27 = vmul.f32 %v591_v19, %v729_v61  ;;  %503 = vst [vmem:[#allocation2 + $0xc8] sm:$0xff] %v471_v62  ;;  %604 = vpow2.f32 %v377_v55 }
  0xb7   :  { %v595_v29 = vpop.eup %594  ;;  %v474_v30 = vmul.f32 %v593_v26, %v731_v0  ;;  %504 = vst [vmem:[#allocation2 + $0xd0] sm:$0xff] %v472_v20  ;;  %606 = vpow2.f32 %v379_v57 }
  0xb8   :  { %v597_v32 = vpop.eup %596  ;;  %v475_v36 = vmul.f32 %v595_v29, %v733_v1  ;;  %505 = vst [vmem:[#allocation2 + $0xd8] sm:$0xff] %v473_v27  ;;  %608 = vpow2.f32 %v381_v63 }
  0xb9   :  { %v599_v41 = vpop.eup %598  ;;  %v476_v42 = vmul.f32 %v597_v32, %v735_v2  ;;  %506 = vst [vmem:[#allocation2 + $0xe0] sm:$0xff] %v474_v30  ;;  %610 = vpow2.f32 %v383_v25 }
  0xba   :  { %v477_v33 = vmul.f32 %v599_v41, %v737_v3  ;;  %507 = vst [vmem:[#allocation2 + $0xe8] sm:$0xff] %v475_v36  ;;  %612 = vpow2.f32 %v385_v28 }
  0xbb   :  { %508 = vst [vmem:[#allocation2 + $0xf0] sm:$0xff] %v476_v42  ;;  %614 = vpow2.f32 %v387_v31 }
  0xbc   :  { %509 = vst [vmem:[#allocation2 + $0xf8] sm:$0xff] %v477_v33 }
  0xbe   :  { %v601_v43 = vpop.eup %600 }
  0xbf   :  { %v603_v15 = vpop.eup %602  ;;  %v462_v34 = vmul.f32 %v601_v43, %v723_v5 }
  0xc0   :  { %v605_v44 = vpop.eup %604  ;;  %v463_v45 = vmul.f32 %v603_v15, %v725_v59 }
  0xc1   :  { %v607_v46 = vpop.eup %606  ;;  %v464_v35 = vmul.f32 %v605_v44, %v727_v60  ;;  %494 = vst [vmem:[#allocation2 + $0x80] sm:$0xff] %v462_v34 }
  0xc2   :  { %v609_v47 = vpop.eup %608  ;;  %v465_v4 = vmul.f32 %v607_v46, %v729_v61  ;;  %495 = vst [vmem:[#allocation2 + $0x88] sm:$0xff] %v463_v45 }
  0xc3   :  { %v611_v16 = vpop.eup %610  ;;  %v466_v11 = vmul.f32 %v609_v47, %v731_v0  ;;  %496 = vst [vmem:[#allocation2 + $0x90] sm:$0xff] %v464_v35 }
  0xc4   :  { %v613_v17 = vpop.eup %612  ;;  %v467_v5 = vmul.f32 %v611_v16, %v733_v1  ;;  %497 = vst [vmem:[#allocation2 + $0x98] sm:$0xff] %v465_v4 }
  0xc5   :  { %v615_v37 = vpop.eup %614  ;;  %v468_v59 = vmul.f32 %v613_v17, %v735_v2  ;;  %498 = vst [vmem:[#allocation2 + $0xa0] sm:$0xff] %v466_v11 }
  0xc6   :  { %v469_v60 = vmul.f32 %v615_v37, %v737_v3  ;;  %499 = vst [vmem:[#allocation2 + $0xa8] sm:$0xff] %v467_v5 }
  0xc7   :  { %500 = vst [vmem:[#allocation2 + $0xb0] sm:$0xff] %v468_v59 }
  0xc8   :  { %501 = vst [vmem:[#allocation2 + $0xb8] sm:$0xff] %v469_v60 }
  0xc9   :  { %627 = shalt.err (!%p624_p4)
}
  0xca   :  { %s628_s5 = scalar_lea.hbm %s858_s3, 4096 }
  0xcb   :  { %p629_p5 = scmp.ne.s32.totalorder %s858_s3, %s628_s5  ;;  %p632_p6 = scmp.lt.u32.totalorder %s628_s5, %s858_s3 }
  0xcd   :  { %p634_p7 = pnand %p632_p6, %p629_p5 }
  0xcf   :  { %637 = shalt.err (!%p634_p7)
}
  0xd0   :  { %s648_s10 = smov 1024   ;;  %s649_s11 = smov 64  }
  0xd1   :  { %521 = dma.vmem_to_hbm [thread:$0]  %s516_s28, 4096, %s858_s3, [#allocation3], %s648_s10, %s648_s10, %s649_s11  }
  0xd2   :  { %638 = dma.done.wait [#allocation3], 4096  }
  0xd3   :  { %639 = vsyncadd [#allocation3], 4294963200 }
  0xd4   :  { %525 = vsyncpa [#allocation3], 1 }

</bundles_post_ra>
